<compile_context>
chip_gen: v7x
topology: tpu7x:2x2x1
jax: 0.10.0
libtpu: 0.0.40
codegen_flags: <defaults>
</compile_context>

<pallas_src>
import math

import jax
import jax.numpy as jnp
from jax.experimental import pallas as pl
from jax.experimental.pallas import tpu as pltpu


# ----------------------------- kernels ------------------------------------


def _make_cat_kernel(d):
    def kernel(x_ref, pe_ref, o_ref):
        # x_ref : (TS, D)   pe_ref : (TS, D)   o_ref : (TS, 2D)
        # Two direct stores into the output halves; no concat temporary.
        o_ref[:, 0:d] = x_ref[...]
        o_ref[:, d:2 * d] = pe_ref[...]

    return kernel


def _pe_add_kernel(x_ref, pe_ref, o_ref):
    # x_ref : (TS, D)   pe_ref : (TS, D)   o_ref : (TS, D)
    o_ref[...] = x_ref[...] + pe_ref[...]


# ----------------------------- wrapper -------------------------------------


def _choose_seq_tile(S, D, out_d, itemsize, vmem_budget_bytes=12 * 1024 * 1024):
    """Largest seq tile (multiple of 8, <= 512) whose double-buffered
    x + pe + out footprint fits the VMEM budget."""
    bytes_per_row = (D + D + out_d) * itemsize * 2  # x + pe + out, 2 buffers
    max_rows = max(8, vmem_budget_bytes // max(1, bytes_per_row))
    ts = min(512, S, max_rows)
    if ts >= S:
        return S  # full-extent block along the sequence axis (always legal)
    return max(8, (ts // 8) * 8)  # keep sublane (8) alignment when tiling


def positional_encoding_forward(x, position_table, comb="cat"):
    """Pallas implementation of PositionalEncoding.forward (dropout = identity).

    x              : [B, S, D]
    position_table : [max_len, D]  (learned 'absolute' table, or the sinusoid
                     buffer when mode='relative' — same lookup either way)
    comb           : 'cat' -> output [B, S, 2D];  'add' -> output [B, S, D]
    """
    B, S, D = x.shape
    # Glue: static slice of the table + single cast to the activation dtype
    # (note: downcasts an f32 table when x is bf16, matching output dtype).
    pe = position_table[:S, :].astype(x.dtype)

    if comb == "add":
        kernel = _pe_add_kernel
        out_d = D
    else:
        kernel = _make_cat_kernel(D)
        out_d = 2 * D

    ts = _choose_seq_tile(S, D, out_d, jnp.dtype(x.dtype).itemsize)
    grid = (B, pl.cdiv(S, ts))

    grid_spec = pltpu.PrefetchScalarGridSpec(
        num_scalar_prefetch=0,
        grid=grid,
        in_specs=[
            # Batch dim squeezed out of the kernel ref -> 2-D (TS, D) tiles.
            pl.BlockSpec((pl.Squeezed(), ts, D), lambda b, s: (b, s, 0)),
            pl.BlockSpec((ts, D), lambda b, s: (s, 0)),
        ],
        out_specs=pl.BlockSpec((pl.Squeezed(), ts, out_d), lambda b, s: (b, s, 0)),
    )

    return pl.pallas_call(
        kernel,
        out_shape=jax.ShapeDtypeStruct((B, S, out_d), x.dtype),
        grid_spec=grid_spec,
        compiler_params=pltpu.CompilerParams(
            # Both axes independent -> shard across v7x's 2 TensorCores.
            dimension_semantics=("parallel", "parallel")
        ),
    )(x, pe)


# ------------------------- parameter construction --------------------------


def make_position_table(max_len, d_model, mode="absolute", key=None):
    if mode == "relative":
        position = jnp.arange(max_len, dtype=jnp.float32)[:, None]
        div_term = jnp.exp(
            jnp.arange(0, d_model, 2, dtype=jnp.float32)
            * (-math.log(10000.0) / d_model)
        )
        pe = jnp.zeros((max_len, d_model), dtype=jnp.float32)
        pe = pe.at[:, 0::2].set(jnp.sin(position * div_term))
        pe = pe.at[:, 1::2].set(jnp.cos(position * div_term))
        return pe
    # mode == 'absolute': learned table ~ init.normal_ (mean 0, std 1)
    assert key is not None
    return jax.random.normal(key, (max_len, d_model), dtype=jnp.float32)


# --------------------------------- demo -------------------------------------


if __name__ == "__main__":
    key = jax.random.PRNGKey(0)
    k_x, k_tbl = jax.random.split(key)

    # Small but lane-dense shapes (D multiple of 128 -> unmasked full-lane
    # stores; S multiple of 8 -> clean sublane tiling).
    B, S, D = 2, 16, 128
    MAX_LEN = 512

    x = jax.random.normal(k_x, (B, S, D), dtype=jnp.float32)
    position_table = make_position_table(MAX_LEN, D, mode="absolute", key=k_tbl)

    # Default module config: mode='absolute', comb='cat'
    out = positional_encoding_forward(x, position_table, comb="cat")
    out = jax.block_until_ready(out)

    # Pure-JAX reference check (dropout is identity in eval).
    ref = jnp.concatenate(
        [x, jnp.broadcast_to(position_table[:S][None], (B, S, D))], axis=-1
    )
    assert out.shape == (B, S, 2 * D)
    assert jnp.allclose(out, ref, atol=1e-6), "cat-mode mismatch vs reference"

    # Also exercise the 'add' branch.
    out_add = positional_encoding_forward(x, position_table, comb="add")
    out_add = jax.block_until_ready(out_add)
    ref_add = x + position_table[:S][None]
    assert jnp.allclose(out_add, ref_add, atol=1e-6), "add-mode mismatch"

    # And the 'relative' (sinusoid buffer) table with comb='cat'.
    sin_table = make_position_table(MAX_LEN, D, mode="relative")
    out_rel = positional_encoding_forward(x, sin_table, comb="cat")
    out_rel = jax.block_until_ready(out_rel)
    ref_rel = jnp.concatenate(
        [x, jnp.broadcast_to(sin_table[:S][None], (B, S, D))], axis=-1
    )
    assert jnp.allclose(out_rel, ref_rel, atol=1e-6), "relative-mode mismatch"

    # TODO(synk): training-mode dropout (stochastic mask via pltpu.prng_seed /
    # pltpu.prng_random_bits) not implemented; forward matches eval semantics.
    print("KERNEL_OK")
</pallas_src>

<mosaic_0001>
module attributes {stable_mosaic.version = 11 : i64} {
  func.func @kernel(%arg0: i32, %arg1: i32, %arg2: memref<1x16x128xf32, #tpu.memory_space<vmem>>, %arg3: memref<16x128xf32, #tpu.memory_space<vmem>>, %arg4: memref<1x16x256xf32, #tpu.memory_space<vmem>>) attributes {dimension_semantics = [#tpu.dimension_semantics<parallel>, #tpu.dimension_semantics<parallel>], iteration_bounds = array<i64: 2, 1>, scalar_prefetch = 0 : i64, scratch_operands = 0 : i64, tpu.core_type = #tpu.core_type<tc>, window_params = [{transform_indices = @transform_0, window_bounds = array<i64: 1, 16, 128>}, {transform_indices = @transform_1, window_bounds = array<i64: 16, 128>}, {transform_indices = @transform_2, window_bounds = array<i64: 1, 16, 256>}]} {
    %c0 = arith.constant 0 : index
    %c0_0 = arith.constant 0 : index
    %c0_1 = arith.constant 0 : index
    %0 = vector.load %arg2[%c0, %c0_0, %c0_1] : memref<1x16x128xf32, #tpu.memory_space<vmem>>, vector<1x16x128xf32>
    %1 = vector.shape_cast %0 : vector<1x16x128xf32> to vector<16x128xf32>
    %c0_2 = arith.constant 0 : index
    %c0_3 = arith.constant 0 : index
    %c0_4 = arith.constant 0 : index
    %2 = vector.load %arg4[%c0_2, %c0_3, %c0_4] : memref<1x16x256xf32, #tpu.memory_space<vmem>>, vector<1x16x128xf32>
    %3 = vector.shape_cast %2 : vector<1x16x128xf32> to vector<16x128xf32>
    %4 = vector.shape_cast %1 : vector<16x128xf32> to vector<1x16x128xf32>
    tpu.vector_store %arg4[%c0_2, %c0_3, %c0_4], %4 {strides = array<i32>} : memref<1x16x256xf32, #tpu.memory_space<vmem>>, vector<1x16x128xf32>,
    %c0_5 = arith.constant 0 : index
    %c0_6 = arith.constant 0 : index
    %5 = vector.load %arg3[%c0_5, %c0_6] : memref<16x128xf32, #tpu.memory_space<vmem>>, vector<16x128xf32>
    %c0_7 = arith.constant 0 : index
    %c0_8 = arith.constant 0 : index
    %c128 = arith.constant 128 : index
    %6 = vector.load %arg4[%c0_7, %c0_8, %c128] : memref<1x16x256xf32, #tpu.memory_space<vmem>>, vector<1x16x128xf32>
    %7 = vector.shape_cast %6 : vector<1x16x128xf32> to vector<16x128xf32>
    %8 = vector.shape_cast %5 : vector<16x128xf32> to vector<1x16x128xf32>
    tpu.vector_store %arg4[%c0_7, %c0_8, %c128], %8 {strides = array<i32>} : memref<1x16x256xf32, #tpu.memory_space<vmem>>, vector<1x16x128xf32>,
    return
  }
  func.func @transform_0(%arg0: i32, %arg1: i32) -> (i32, i32, i32) {
    %c0_i32 = arith.constant 0 : i32
    %c0_i32_0 = arith.constant 0 : i32
    return %arg0, %arg1, %c0_i32 : i32, i32, i32
  }
  func.func @transform_1(%arg0: i32, %arg1: i32) -> (i32, i32) {
    %c0_i32 = arith.constant 0 : i32
    %c0_i32_0 = arith.constant 0 : i32
    return %arg1, %c0_i32 : i32, i32
  }
  func.func @transform_2(%arg0: i32, %arg1: i32) -> (i32, i32, i32) {
    %c0_i32 = arith.constant 0 : i32
    %c0_i32_0 = arith.constant 0 : i32
    return %arg0, %arg1, %c0_i32 : i32, i32, i32
  }
}

</mosaic_0001>

<bundles_post_ra>
// kernel: tpu_custom_call.1
= control target key start
LH: loop header
LB: loop body
LE: loop exit
PB: predicated region body
PF: predicated region fallthrough
CT: control target
= control target key end

     0   :  { %7 = vsyncpa [#allocation3], 0  ;;  %s820_s0 = inlined_call_operand.hbm [shape: f32[2,16,128], index: 0, kind: input, shape index: {}]   ;;  %s821_s1 = inlined_call_operand.hbm [shape: f32[16,128], index: 1, kind: input, shape index: {}]   ;;  %s822_s2 = inlined_call_operand.hbm [shape: f32[2,16,256], index: 2, kind: output, shape index: {}]  }
   0x1   :  { %9 = vsyncpa [#allocation3 + $0x1], 0 }
   0x2   :  { %10 = vsyncpa [#allocation6], 0 }
   0x3   :  { %11 = vsyncpa [#allocation4], 0 }
   0x4   :  { %13 = vsyncpa [#allocation4 + $0x1], 0  ;;  %s594_s9 = smov 0   ;;  %s596_s10 = smov 0  }
   0x5   :  { %s598_s11 = smov 0   ;;  %s600_s12 = smov 0  }
   0x6   :  { %s602_s13 = smov 0   ;;  %s604_s14 = smov 0  }
   0x7 LB: > { %s330_s15 = sadd.s32 4294967295, %s570_s14   ;;  %s331_s16 = sadd.s32 4294967294, %s570_s14   ;;  %s570_s14 = sphi %s604_s14, %s19_s14   ;;  %s566_s13 = sphi %s602_s13, %s846_s13   ;;  %s562_s12 = sphi %s600_s12, %s845_s12   ;;  %s558_s11 = sphi %s598_s11, %s844_s11   ;;  %s554_s10 = sphi %s596_s10, %s843_s10   ;;  %s550_s9 = sphi %s594_s9, %s842_s9  }
   0x8   : > { %p53_p0 = scmp.ne.s32.totalorder %s554_s10, %s550_s9  ;;  %p628_p1 = scmp.eq.s32.totalorder %s330_s15, 0 }
   0x9   : > { %p632_p2 = scmp.eq.s32.totalorder %s330_s15, 1  ;;  %p111_p3 = scmp.eq.s32.totalorder %s331_s16, 1 }
   0xa   : > { %s827_s17 = scalar_select %p628_p1, 1, 0 }
   0xb   : > { %s828_s18 = scalar_select %p632_p2, 1, 0 }
   0xc   : > { %p638_p4 = por %p628_p1, %p53_p0  ;;  %p332_p5 = scmp.ge.s32.totalorder %s570_s14, 1 }
   0xd   : > { %p643_p6 = por %p111_p3, %p53_p0  ;;  %p118_p7 = scmp.lt.s32.totalorder %s570_s14, 3 }
   0xe   : > { %s829_s19 = scalar_select %p638_p4, 1, 0 }
   0xf   : > { %s830_s20 = scalar_select %p643_p6, 1, 0 }
  0x10   : > { %p648_p8 = pnand %p332_p5, %p118_p7  ;;  %s572_s22 = smov [#allocation5]  }
  0x11   : > { %s133_s23 = sshll.u32 %s572_s22, 4  ;;  %s31_s25 = sadd.s32 1, %s566_s13  ;;  %s134_s23 = int_to_ptr.vmem [resolvable:$true] %s133_s23 }
  0x12   : > { %s831_s21 = scalar_select %p648_p8, 1, 0 }
  0x13   : > { %p357_p9 = pneg %p648_p8  ;;  %s426_s28 = scalar_lea.hbm %s821_s1, 256 }
  0x14   : > { %p427_p12 = scmp.ne.s32.totalorder %s821_s1, %s426_s28  ;;  %p433_p5 = scmp.lt.u32.totalorder %s426_s28, %s821_s1 }
  0x15   : > { %p657_p11 = pnand %p357_p9, %p628_p1 }
  0x17   : > { %p428_p13 = pneg %p657_p11 }
  0x19   : > { %p429_p0 = pnand %p428_p13, %p427_p12 }
  0x1b   : > { %p430_p3 = pneg %p429_p0 }
  0x1d   : > { %p435_p7 = pnand %p433_p5, %p430_p3 }
  0x1f   : > { %438 = shalt.err (!%p435_p7)
}
  0x20   : > { %s439_s5 = scalar_lea.vmem %s134_s23, 256  ;;  %p447_p1 = scmp.lt.s32.totalorder %s134_s23, %s134_s23 }
  0x21   : > { %p440_p9 = scmp.ne.s32.totalorder %s134_s23, %s439_s5  ;;  %p448_p4 = scmp.lt.s32.totalorder %s439_s5, %s439_s5 }
  0x23   : > { %p442_p10 = pnand %p440_p9, %p428_p13  ;;  %p449_p8 = por %p448_p4, %p447_p1 }
  0x25   : > { %p443_p6 = pneg %p442_p10 }
  0x27   : > { %p450_p2 = pnand %p449_p8, %p443_p6 }
  0x29   : > { %453 = shalt.err (!%p450_p2)
}
  0x2a   : > { %s573_s6 = smov 128   ;;  %s574_s7 = smov 8  }
  0x2b   : > { %360 = dma.hbm_to_vmem [thread:$0]  (!%p657_p11), %s821_s1, 256, %s134_s23, [#allocation6], %s573_s6, %s573_s6, %s574_s7  }
  0x2c   : > { %p33_p1 = scmp.ge.s32.totalorder %s31_s25, 2  ;;  %s40_s16 = sadd.s32 1, %s558_s11 }
  0x2d   : > { %p47_p2 = scmp.ne.s32.totalorder %s558_s11, %s554_s10  ;;  %p48_p4 = scmp.eq.s32.totalorder %s570_s14, 0 }
  0x2e   : > { %s848_s25 = smov (%p33_p1, %s31_s25), 0  ;;  %p834_p8 = scmp.ne.s32.totalorder %s828_s18, 0 }
  0x2f   : > { %p687_p6 = por %p48_p4, %p47_p2  ;;  %s35_s26 = ssub.s32 %s566_s13, %s848_s25 }
  0x30   : > { %p693_p10 = por %p834_p8, %p47_p2  ;;  %p370_p12 = scmp.lt.s32.totalorder %s570_s14, 2 }
  0x31   : > { %p38_p11 = scmp.eq.s32.totalorder %s35_s26, 0  ;;  %s147_s23 = sand.u32 1, %s558_s11  }
  0x32   : > { %s335_s27 = sshll.u32 %s147_s23, 4  ;;  %s347_s29 = sshll.u32 %s566_s13, 8 }
  0x33   : > { %s702_s28 = scalar_select %p38_p11, %s558_s11, %s40_s16  }
  0x34   : > { %s708_s4 = scalar_lea.hbm %s820_s0, %s347_s29  ;;  %s151_s18 = scalar_lea.vmem [#allocation2], %s335_s27 }
  0x35   : > { %s160_s5 = sshll.u32 %s151_s18, 4  ;;  %p714_p13 = pnand %p370_p12, %p687_p6  ;;  %s710_s5 = int_to_ptr.vmem [resolvable:$true] %s160_s5 }
  0x36   : > { %s718_s15 = scalar_lea.sflag [#allocation3], %s147_s23  ;;  %s454_s16 = scalar_lea.hbm %s708_s4, 256 }
  0x37   : > { %p455_p0 = scmp.ne.s32.totalorder %s708_s4, %s454_s16  ;;  %p456_p3 = pneg %p714_p13 }
  0x38   : > { %s459_s22 = scalar_lea.hbm %s820_s0, 512  ;;  %p460_p9 = scmp.lt.u32.totalorder %s708_s4, %s820_s0 }
  0x39   : > { %p457_p5 = pnand %p456_p3, %p455_p0  ;;  %p461_p1 = scmp.lt.u32.totalorder %s459_s22, %s454_s16 }
  0x3a   : > { %p463_p4 = scmp.lt.u32.totalorder %s454_s16, %s708_s4 }
  0x3b   : > { %p458_p7 = pneg %p457_p5  ;;  %p462_p2 = por %p461_p1, %p460_p9 }
  0x3d   : > { %p464_p6 = por %p463_p4, %p462_p2 }
  0x3f   : > { %p465_p8 = pnand %p464_p6, %p458_p7 }
  0x41   : > { %468 = shalt.err (!%p465_p8)
}
  0x42   : > { %s469_s23 = scalar_lea.vmem %s710_s5, 256  ;;  %s575_s3 = smov [#allocation2]  }
  0x43   : > { %p470_p12 = scmp.ne.s32.totalorder %s710_s5, %s469_s23  ;;  %s474_s18 = sshll.u32 %s575_s3, 4  ;;  %s475_s18 = int_to_ptr.vmem [resolvable:$false] %s474_s18 }
  0x44   : > { %s476_s26 = scalar_lea.vmem %s475_s18, 512  ;;  %p477_p5 = scmp.lt.s32.totalorder %s710_s5, %s475_s18 }
  0x45   : > { %p472_p11 = pnand %p470_p12, %p456_p3  ;;  %p478_p9 = scmp.lt.s32.totalorder %s476_s26, %s469_s23 }
  0x47   : > { %p473_p0 = pneg %p472_p11  ;;  %p479_p1 = por %p478_p9, %p477_p5 }
  0x49   : > { %p480_p2 = pnand %p479_p1, %p473_p0 }
  0x4b   : > { %483 = shalt.err (!%p480_p2)
}
  0x4c   : > { %364 = dma.hbm_to_vmem [thread:$0]  (!%p714_p13), %s708_s4, 256, %s710_s5, %s718_s15, %s573_s6, %s573_s6, %s574_s7  }
  0x4d   : > { %p837_p3 = scmp.ne.s32.totalorder %s831_s21, 0 }
  0x4e   : > { %s752_s16 = sand.u32 (!%p837_p3), 1, %s554_s10   ;;  %p838_p7 = scmp.ne.s32.totalorder (!%p837_p3), %s829_s19, 0 }
  0x4f   : > { %172 = sbr.rel (%p837_p3) target bundleno = 116 (0x74), region = 28  ;;  %s339_s27 = sshll.u32 (!%p837_p3), %s752_s16, 4 }
  0x50   : > { %s175_s22 = scalar_lea.sflag (!%p837_p3), [#allocation3], %s752_s16  ;;  %s178_s29 = scalar_lea.vmem (!%p837_p3), [#allocation2], %s339_s27 }
  0x56   : > { %537 = dma.done.wait (%p838_p7), %s175_s22, 256  }
  0x57   : > { %539 = vsyncadd (%p838_p7), %s175_s22, 4294967040  ;;  %p839_p4 = scmp.ne.s32.totalorder %s827_s17, 0 }
  0x59   : > { %541 = dma.done.wait (%p839_p4), [#allocation6], 256  }
  0x5a   : > { %543 = vsyncadd (%p839_p4), [#allocation6], 4294967040  ;;  %s341_s21 = sshll.u32 %s752_s16, 5  ;;  %s348_s4 = sshll.u32 %s562_s12, 9  ;;  %v206_v0 = vld [vmem:[%s178_s29] sm:$0xff]  ;;  %v207_v1 = vld [vmem:[%s178_s29 + $0x8] sm:$0xff] }
  0x5b   : > { %s202_s6 = scalar_lea.vmem [#allocation7], %s341_s21  ;;  %s771_s19 = scalar_lea.hbm %s822_s2, %s348_s4  ;;  %v210_v2 = vld [vmem:[#allocation5] sm:$0xff]  ;;  %v211_v3 = vld [vmem:[#allocation5 + $0x8] sm:$0xff] }
  0x5c   : > { %s231_s7 = sshll.u32 %s202_s6, 4  ;;  %208 = vst [vmem:[%s202_s6] sm:$0xff] %v206_v0  ;;  %209 = vst [vmem:[%s202_s6 + $0x10] sm:$0xff] %v207_v1  ;;  %s215_s17 = scalar_lea.sflag [#allocation4], %s752_s16  ;;  %s766_s7 = int_to_ptr.vmem [resolvable:$true] %s231_s7 }
  0x5d   : > { %212 = vst [vmem:[%s202_s6 + $0x8] sm:$0xff] %v210_v2  ;;  %213 = vst [vmem:[%s202_s6 + $0x18] sm:$0xff] %v211_v3  ;;  %s484_s12 = scalar_lea.vmem %s766_s7, 512  ;;  %s576_s15 = smov [#allocation7]  }
  0x5e   : > { %p485_p13 = scmp.ne.s32.totalorder %s766_s7, %s484_s12  ;;  %s488_s30 = sshll.u32 %s576_s15, 4  ;;  %s489_s30 = int_to_ptr.vmem [resolvable:$false] %s488_s30 }
  0x5f   : > { %s490_s23 = scalar_lea.vmem %s489_s30, 1024  ;;  %p491_p12 = scmp.lt.s32.totalorder %s766_s7, %s489_s30 }
  0x60   : > { %p486_p6 = pnand %p485_p13, %p693_p10  ;;  %p492_p11 = scmp.lt.s32.totalorder %s490_s23, %s484_s12 }
  0x62   : > { %p487_p8 = pneg %p486_p6  ;;  %p493_p0 = por %p492_p11, %p491_p12 }
  0x64   : > { %p494_p5 = pnand %p493_p0, %p487_p8 }
  0x66   : > { %497 = shalt.err (!%p494_p5)
}
  0x67   : > { %s498_s3 = scalar_lea.hbm %s771_s19, 512  ;;  %s502_s27 = scalar_lea.hbm %s822_s2, 1024 }
  0x68   : > { %p499_p9 = scmp.ne.s32.totalorder %s771_s19, %s498_s3  ;;  %p503_p3 = scmp.lt.u32.totalorder %s771_s19, %s822_s2 }
  0x69   : > { %p504_p7 = scmp.lt.u32.totalorder %s502_s27, %s498_s3  ;;  %p506_p13 = scmp.lt.u32.totalorder %s498_s3, %s771_s19 }
  0x6a   : > { %p500_p1 = pnand %p499_p9, %p693_p10 }
  0x6b   : > { %p505_p4 = por %p504_p7, %p503_p3 }
  0x6c   : > { %p501_p2 = pneg %p500_p1 }
  0x6d   : > { %p507_p6 = por %p506_p13, %p505_p4 }
  0x6f   : > { %p508_p8 = pnand %p507_p6, %p501_p2 }
  0x71   : > { %511 = shalt.err (!%p508_p8)
}
  0x72   : > { %s577_s21 = smov 256   ;;  %s578_s6 = smov 16  }
  0x73   : > { %355 = dma.vmem_to_hbm [thread:$0]  (%p693_p10), %s766_s7, 512, %s771_s19, %s215_s17, %s577_s21, %s577_s21, %s578_s6  }
  0x74 PF: > { %s246_s4 = sand.u32 1, %s550_s9   ;;  %p840_p12 = scmp.ne.s32.totalorder %s830_s20, 0 }
  0x75   : > { %p841_p11 = scmp.ge.s32.totalorder %s570_s14, 2  ;;  %s247_s5 = scalar_lea.sflag [#allocation4], %s246_s4 }
  0x77   : > { %p366_p0 = pnand %p841_p11, %p840_p12 }
  0x79   : > { %545 = dma.done.wait (!%p366_p0), %s247_s5, 512  }
  0x7a   : > { %547 = vsyncadd (!%p366_p0), %s247_s5, 4294966784  ;;  %s19_s14 = sadd.s32 1, %s570_s14   ;;  %s842_s9 = smov %s554_s10 }
  0x7b   : > { %p16_p5 = scmp.ge.s32.totalorder %s19_s14, 4   ;;  %s843_s10 = smov %s558_s11 }
  0x7c   : > { %s844_s11 = smov %s702_s28  ;;  %s845_s12 = smov %s566_s13 }
  0x7d   : > { %s846_s13 = smov %s848_s25  ;;  %18 = sbr.rel (!%p16_p5) target bundleno = 7 (0x7), region = 78 }
  0x84   :  { %252 = vsyncpa [#allocation3], 1 }
  0x85   :  { %254 = vsyncpa [#allocation3 + $0x1], 1 }
  0x86   :  { %255 = vsyncpa [#allocation6], 1 }
  0x87   :  { %256 = vsyncpa [#allocation4], 1 }
  0x88   :  { %258 = vsyncpa [#allocation4 + $0x1], 1 }

</bundles_post_ra>
